<compile_context>
chip_gen: v7x
topology: tpu7x:2x2x1
jax: 0.10.0
libtpu: 0.0.40
codegen_flags: <defaults>
</compile_context>

<pallas_src>
import numpy as np
import jax
import jax.numpy as jnp
from jax import lax
from jax.experimental import pallas as pl
from jax.experimental.pallas import tpu as pltpu

N, H, W = 2, 16, 16
CI, NH1, NH2, NF = 4, 8, 8, 8     # ni=4, nf=8, expansion=1 -> nh1=nh2=nf=8
KS = 3
PAD = (KS - 1) // 2

ROWS = N * H                      # 32 sublane rows (batch folded into M)
LN_IN = W * CI                    # 64  input lanes per row
LN_H = W * NH1                    # 128 hidden lanes per row (exactly one vreg width)
LN_OUT = W * NF                   # 128 output lanes per row


def mbres_kernel(x_ref, w1_ref, b1_ref, w2_ref, b2_ref, w3id_ref, b3id_ref, o_ref):
    x = x_ref[...]                                             # (32, 64) lane-dense

    # convpath layer 1: 1x1 conv + BN(folded) + ReLU as one block-diag matmul.
    h1 = jnp.dot(x, w1_ref[...], preferred_element_type=jnp.float32) + b1_ref[...]
    h1 = jnp.maximum(h1, 0.0)                                  # (32, 128)

    # H-direction neighbours via value-level sublane shifts (no VMEM scratch).
    zero_row = jnp.zeros((1, LN_H), jnp.float32)
    h_up = jnp.concatenate([zero_row, h1[:-1, :]], axis=0)     # row r <- h1[r-1]
    h_dn = jnp.concatenate([h1[1:, :], zero_row], axis=0)      # row r <- h1[r+1]
    # zero rows that crossed an image's top/bottom border (rows interleave N images)
    hrow = lax.broadcasted_iota(jnp.int32, (ROWS, LN_H), 0) % H
    h_up = jnp.where(hrow == 0, 0.0, h_up)
    h_dn = jnp.where(hrow == H - 1, 0.0, h_dn)

    # convpath layer 2: 3x3 conv (stride 1, pad 1) + BN(folded) + ReLU as ONE
    # matmul: W-taps live in the banded weight, H-taps in the lane concat.
    cols = jnp.concatenate([h_up, h1, h_dn], axis=1)           # (32, 384)
    h2 = jnp.dot(cols, w2_ref[...], preferred_element_type=jnp.float32) + b2_ref[...]
    h2 = jnp.maximum(h2, 0.0)                                  # (32, 128)

    # convpath layer 3 (1x1 + BN BatchZero, no act) fused with idpath (1x1 + BN):
    # [h2 | x] @ [[kron(I,w3)],[kron(I,wid)]] == h3 + idpath, then the final ReLU.
    h2x = jnp.concatenate([h2, x], axis=1)                     # (32, 192)
    out = jnp.dot(h2x, w3id_ref[...], preferred_element_type=jnp.float32) + b3id_ref[...]
    o_ref[...] = jnp.maximum(out, 0.0)                         # (32, 128) unmasked store


def mbres_block(x_nhwc, packed):
    """x_nhwc: (N, H, W, CI) f32 -> (N, H, W, NF) f32."""
    w1_big, b1_row, w2_big, b2_row, w3id_big, b3id_row = packed
    x_slab = x_nhwc.reshape(ROWS, LN_IN)          # lane-dense input slab (free reshape)

    vmem = pl.BlockSpec(memory_space=pltpu.MemorySpace.VMEM)
    out_slab = pl.pallas_call(
        mbres_kernel,
        out_shape=jax.ShapeDtypeStruct((ROWS, LN_OUT), jnp.float32),
        in_specs=[vmem] * 7,
        out_specs=vmem,
    )(x_slab, w1_big, b1_row, w2_big, b2_row, w3id_big, b3id_row)

    return out_slab.reshape(N, H, W, NF)          # free reshape back to NHWC


# -------------------------- host-side parameter prep --------------------------

def make_params(key):
    """Per-layer conv weights with BN folded in (inference semantics)."""
    ks = jax.random.split(key, 20)

    def bn_params(k0, k1, k2, k3, c):
        gamma = 1.0 + 0.1 * jax.random.normal(k0, (c,), jnp.float32)
        beta = 0.05 * jax.random.normal(k1, (c,), jnp.float32)
        mean = 0.1 * jax.random.normal(k2, (c,), jnp.float32)
        var = jax.random.uniform(k3, (c,), jnp.float32, 0.5, 1.5)
        return gamma, beta, mean, var

    def fold(w, bnp, eps=1e-5):
        gamma, beta, mean, var = bnp
        scale = gamma * lax.rsqrt(var + eps)
        return w * scale, (beta - mean * scale)[None, :]   # bias as (1, C)

    w1 = 0.2 * jax.random.normal(ks[0], (CI, NH1), jnp.float32)
    w2 = 0.1 * jax.random.normal(ks[1], (KS, KS, NH1, NH2), jnp.float32)
    w3 = 0.2 * jax.random.normal(ks[2], (NH2, NF), jnp.float32)
    wid = 0.2 * jax.random.normal(ks[3], (CI, NF), jnp.float32)

    w1f, b1f = fold(w1, bn_params(ks[4], ks[5], ks[6], ks[7], NH1))
    w2f, b2f = fold(w2, bn_params(ks[8], ks[9], ks[10], ks[11], NH2))
    w3f, b3f = fold(w3, bn_params(ks[12], ks[13], ks[14], ks[15], NF))
    widf, bidf = fold(wid, bn_params(ks[16], ks[17], ks[18], ks[19], NF))
    return (w1f, b1f, w2f, b2f, w3f, b3f, widf, bidf)


def pack_params(params):
    """Pack per-layer weights into lane-dense slab operands (host-side, once)."""
    w1f, b1f, w2f, b2f, w3f, b3f, widf, bidf = [np.asarray(p) for p in params]
    eye_w = np.eye(W, dtype=np.float32)

    # layer 1: 1x1 conv on the (.., W*CI) slab == block-diagonal weight.
    w1_big = np.kron(eye_w, w1f).astype(np.float32)               # (64, 128)
    b1_row = np.tile(b1f, (1, W)).astype(np.float32)              # (1, 128)

    # layer 2: 3x3 conv. Rows ordered [kh=0 (h-1) | kh=1 (h) | kh=2 (h+1)];
    # within each kh-segment a banded block matrix folds the W taps + borders.
    w2_big = np.zeros((KS * W * NH1, W * NF), np.float32)         # (384, 128)
    for kh in range(KS):
        for kw in range(KS):
            shift = np.zeros((W, W), np.float32)                  # S[w_in, w_out]
            for w_out in range(W):
                w_in = w_out + kw - PAD
                if 0 <= w_in < W:
                    shift[w_in, w_out] = 1.0
            w2_big[kh * W * NH1:(kh + 1) * W * NH1, :] += np.kron(shift, w2f[kh, kw])
    b2_row = np.tile(b2f, (1, W)).astype(np.float32)              # (1, 128)

    # layer 3 + idpath fused along K: [h2 | x] @ [[kron(I,w3)],[kron(I,wid)]].
    w3id_big = np.concatenate([np.kron(eye_w, w3f),
                               np.kron(eye_w, widf)], axis=0).astype(np.float32)  # (192, 128)
    b3id_row = np.tile(b3f + bidf, (1, W)).astype(np.float32)     # (1, 128)

    return tuple(jnp.asarray(a) for a in
                 (w1_big, b1_row, w2_big, b2_row, w3id_big, b3id_row))


def ref_forward(x_nhwc, params):
    """Pure-JAX reference (lax convolutions) for correctness check."""
    w1, b1, w2, b2, w3, b3, wid, bid = params
    dn = ('NHWC', 'HWIO', 'NHWC')

    def conv1x1(x, w, b):
        y = lax.conv_general_dilated(x, w[None, None], (1, 1), 'VALID',
                                     dimension_numbers=dn)
        return y + b.reshape(1, 1, 1, -1)

    h1 = jax.nn.relu(conv1x1(x_nhwc, w1, b1))
    h2 = lax.conv_general_dilated(h1, w2, (1, 1), ((PAD, PAD), (PAD, PAD)),
                                  dimension_numbers=dn) + b2.reshape(1, 1, 1, -1)
    h2 = jax.nn.relu(h2)
    h3 = conv1x1(h2, w3, b3)
    idp = conv1x1(x_nhwc, wid, bid)
    return jax.nn.relu(h3 + idp)


if __name__ == "__main__":
    key = jax.random.PRNGKey(0)
    kx, kp = jax.random.split(key)

    # PyTorch-convention input (NCHW), transposed to kernel layout (NHWC).
    x_nchw = jax.random.normal(kx, (N, CI, H, W), jnp.float32)
    x_nhwc = jnp.transpose(x_nchw, (0, 2, 3, 1))

    params = make_params(kp)
    packed = pack_params(params)

    out = mbres_block(x_nhwc, packed)
    out = jax.block_until_ready(out)

    ref = ref_forward(x_nhwc, params)
    assert out.shape == (N, H, W, NF)
    assert jnp.allclose(out, ref, atol=1e-2, rtol=1e-2), \
        float(jnp.max(jnp.abs(out - ref)))

    print("KERNEL_OK")
</pallas_src>

<mosaic_0001>
module attributes {stable_mosaic.version = 11 : i64} {
  func.func @mbres_kernel(%arg0: memref<32x64xf32, #tpu.memory_space<vmem>>, %arg1: memref<64x128xf32, #tpu.memory_space<vmem>>, %arg2: memref<1x128xf32, #tpu.memory_space<vmem>>, %arg3: memref<384x128xf32, #tpu.memory_space<vmem>>, %arg4: memref<1x128xf32, #tpu.memory_space<vmem>>, %arg5: memref<192x128xf32, #tpu.memory_space<vmem>>, %arg6: memref<1x128xf32, #tpu.memory_space<vmem>>, %arg7: memref<32x128xf32, #tpu.memory_space<vmem>>) attributes {dimension_semantics = [], scalar_prefetch = 0 : i64, scratch_operands = 0 : i64, tpu.core_type = #tpu.core_type<tc>} {
    %c0 = arith.constant 0 : index
    %c0_0 = arith.constant 0 : index
    %0 = vector.load %arg0[%c0, %c0_0] : memref<32x64xf32, #tpu.memory_space<vmem>>, vector<32x64xf32>
    %c0_1 = arith.constant 0 : index
    %c0_2 = arith.constant 0 : index
    %1 = vector.load %arg1[%c0_1, %c0_2] : memref<64x128xf32, #tpu.memory_space<vmem>>, vector<64x128xf32>
    %cst = arith.constant dense<0.000000e+00> : vector<32x128xf32>
    %2 = tpu.matmul %0, %1, %cst {dimension_numbers = #tpu.dot_dimension_numbers<[1], [0], [0], [1], [0, 0, 1, 1], [], []>} : vector<32x64xf32>, vector<64x128xf32>, vector<32x128xf32> -> vector<32x128xf32>
    %c0_3 = arith.constant 0 : index
    %c0_4 = arith.constant 0 : index
    %3 = vector.load %arg2[%c0_3, %c0_4] : memref<1x128xf32, #tpu.memory_space<vmem>>, vector<1x128xf32>
    %4 = vector.broadcast %3 : vector<1x128xf32> to vector<32x128xf32>
    %5 = arith.addf %2, %4 : vector<32x128xf32>
    %cst_5 = arith.constant 0.000000e+00 : f32
    %6 = vector.broadcast %cst_5 : f32 to vector<32x128xf32>
    %7 = arith.maximumf %5, %6 : vector<32x128xf32>
    %cst_6 = arith.constant 0.000000e+00 : f32
    %8 = vector.broadcast %cst_6 : f32 to vector<1x128xf32>
    %9 = vector.extract_strided_slice %7 {offsets = [0, 0], sizes = [31, 128], strides = [1, 1]} : vector<32x128xf32> to vector<31x128xf32>
    %10 = tpu.concatenate %8, %9 in 0 : vector<1x128xf32>, vector<31x128xf32> -> vector<32x128xf32>
    %11 = vector.extract_strided_slice %7 {offsets = [1, 0], sizes = [31, 128], strides = [1, 1]} : vector<32x128xf32> to vector<31x128xf32>
    %12 = tpu.concatenate %11, %8 in 0 : vector<31x128xf32>, vector<1x128xf32> -> vector<32x128xf32>
    %13 = tpu.iota {dimensions = array<i32: 0>} : vector<32x128xi32>
    %c16_i32 = arith.constant 16 : i32
    %c0_i32 = arith.constant 0 : i32
    %14 = arith.cmpi eq, %c16_i32, %c0_i32 : i32
    %c1_i32 = arith.constant 1 : i32
    %15 = arith.select %14, %c1_i32, %c16_i32 : i32
    %16 = vector.broadcast %15 : i32 to vector<32x128xi32>
    %17 = arith.remsi %13, %16 : vector<32x128xi32>
    %c0_i32_7 = arith.constant 0 : i32
    %18 = vector.broadcast %c0_i32_7 : i32 to vector<32x128xi32>
    %19 = arith.cmpi ne, %17, %18 : vector<32x128xi32>
    %c0_i32_8 = arith.constant 0 : i32
    %20 = vector.broadcast %c0_i32_8 : i32 to vector<32x128xi32>
    %21 = arith.cmpi slt, %17, %20 : vector<32x128xi32>
    %c0_i32_9 = arith.constant 0 : i32
    %22 = arith.cmpi slt, %15, %c0_i32_9 : i32
    %23 = vector.broadcast %22 : i1 to vector<32x128xi1>
    %24 = vector.broadcast %23 : vector<32x128xi1> to vector<32x128xi1>
    %25 = arith.xori %21, %24 : vector<32x128xi1>
    %26 = arith.andi %25, %19 : vector<32x128xi1>
    %27 = vector.broadcast %15 : i32 to vector<32x128xi32>
    %28 = arith.addi %17, %27 : vector<32x128xi32>
    %29 = arith.select %26, %28, %17 : vector<32x128xi1>, vector<32x128xi32>
    %c0_i32_10 = arith.constant 0 : i32
    %30 = vector.broadcast %c0_i32_10 : i32 to vector<32x128xi32>
    %31 = arith.cmpi eq, %29, %30 : vector<32x128xi32>
    %cst_11 = arith.constant 0.000000e+00 : f32
    %32 = vector.broadcast %cst_11 : f32 to vector<32x128xf32>
    %33 = arith.select %31, %32, %10 : vector<32x128xi1>, vector<32x128xf32>
    %c15_i32 = arith.constant 15 : i32
    %34 = vector.broadcast %c15_i32 : i32 to vector<32x128xi32>
    %35 = arith.cmpi eq, %29, %34 : vector<32x128xi32>
    %cst_12 = arith.constant 0.000000e+00 : f32
    %36 = vector.broadcast %cst_12 : f32 to vector<32x128xf32>
    %37 = arith.select %35, %36, %12 : vector<32x128xi1>, vector<32x128xf32>
    %38 = tpu.concatenate %33, %7, %37 in 1 : vector<32x128xf32>, vector<32x128xf32>, vector<32x128xf32> -> vector<32x384xf32>
    %c0_13 = arith.constant 0 : index
    %c0_14 = arith.constant 0 : index
    %39 = vector.load %arg3[%c0_13, %c0_14] : memref<384x128xf32, #tpu.memory_space<vmem>>, vector<384x128xf32>
    %cst_15 = arith.constant dense<0.000000e+00> : vector<32x128xf32>
    %40 = tpu.matmul %38, %39, %cst_15 {dimension_numbers = #tpu.dot_dimension_numbers<[1], [0], [0], [1], [0, 0, 1, 1], [], []>} : vector<32x384xf32>, vector<384x128xf32>, vector<32x128xf32> -> vector<32x128xf32>
    %c0_16 = arith.constant 0 : index
    %c0_17 = arith.constant 0 : index
    %41 = vector.load %arg4[%c0_16, %c0_17] : memref<1x128xf32, #tpu.memory_space<vmem>>, vector<1x128xf32>
    %42 = vector.broadcast %41 : vector<1x128xf32> to vector<32x128xf32>
    %43 = arith.addf %40, %42 : vector<32x128xf32>
    %cst_18 = arith.constant 0.000000e+00 : f32
    %44 = vector.broadcast %cst_18 : f32 to vector<32x128xf32>
    %45 = arith.maximumf %43, %44 : vector<32x128xf32>
    %46 = tpu.concatenate %45, %0 in 1 : vector<32x128xf32>, vector<32x64xf32> -> vector<32x192xf32>
    %c0_19 = arith.constant 0 : index
    %c0_20 = arith.constant 0 : index
    %47 = vector.load %arg5[%c0_19, %c0_20] : memref<192x128xf32, #tpu.memory_space<vmem>>, vector<192x128xf32>
    %cst_21 = arith.constant dense<0.000000e+00> : vector<32x128xf32>
    %48 = tpu.matmul %46, %47, %cst_21 {dimension_numbers = #tpu.dot_dimension_numbers<[1], [0], [0], [1], [0, 0, 1, 1], [], []>} : vector<32x192xf32>, vector<192x128xf32>, vector<32x128xf32> -> vector<32x128xf32>
    %c0_22 = arith.constant 0 : index
    %c0_23 = arith.constant 0 : index
    %49 = vector.load %arg6[%c0_22, %c0_23] : memref<1x128xf32, #tpu.memory_space<vmem>>, vector<1x128xf32>
    %50 = vector.broadcast %49 : vector<1x128xf32> to vector<32x128xf32>
    %51 = arith.addf %48, %50 : vector<32x128xf32>
    %cst_24 = arith.constant 0.000000e+00 : f32
    %52 = vector.broadcast %cst_24 : f32 to vector<32x128xf32>
    %53 = arith.maximumf %51, %52 : vector<32x128xf32>
    %c0_25 = arith.constant 0 : index
    %c0_26 = arith.constant 0 : index
    %54 = vector.load %arg7[%c0_25, %c0_26] : memref<32x128xf32, #tpu.memory_space<vmem>>, vector<32x128xf32>
    tpu.vector_store %arg7[%c0_25, %c0_26], %53 {strides = array<i32>} : memref<32x128xf32, #tpu.memory_space<vmem>>, vector<32x128xf32>,
    return
  }
}

</mosaic_0001>

<bundles_post_ra>
// kernel: tpu_custom_call.1
= control target key start
LH: loop header
LB: loop body
LE: loop exit
PB: predicated region body
PF: predicated region fallthrough
CT: control target
= control target key end

     0   :  { %12 = vsyncpa [#allocation3], 0  ;;  %s1282_s0 = inlined_call_operand.hbm [shape: f32[32,64], index: 0, kind: input, shape index: {}]   ;;  %s1283_s1 = inlined_call_operand.hbm [shape: f32[64,128], index: 1, kind: input, shape index: {}]   ;;  %s1284_s2 = inlined_call_operand.vmem [shape: f32[1,128], index: 2, kind: input, shape index: {}]   ;;  %s1285_s3 = inlined_call_operand.hbm [shape: f32[384,128], index: 3, kind: input, shape index: {}]   ;;  %s1286_s4 = inlined_call_operand.vmem [shape: f32[1,128], index: 4, kind: input, shape index: {}]   ;;  %s1287_s5 = inlined_call_operand.hbm [shape: f32[192,128], index: 5, kind: input, shape index: {}]   ;;  %s1288_s6 = inlined_call_operand.vmem [shape: f32[1,128], index: 6, kind: input, shape index: {}]   ;;  %s1289_s7 = inlined_call_operand.hbm [shape: f32[32,128], index: 7, kind: output, shape index: {}]  }
   0x1   :  { %13 = vsyncpa [#allocation6], 0 }
   0x2   :  { %14 = vsyncpa [#allocation9], 0 }
   0x3   :  { %15 = vsyncpa [#allocation4], 0  ;;  %s1075_s24 = smov [#allocation5]   ;;  %s1076_s26 = smov [#allocation2]  }
   0x4   :  { %s33_s25 = sshll.u32 %s1075_s24, 4  ;;  %s21_s27 = sshll.u32 %s1076_s26, 4  ;;  %s34_s25 = int_to_ptr.vmem [resolvable:$true] %s33_s25  ;;  %s1123_s27 = int_to_ptr.vmem [resolvable:$true] %s21_s27 }
   0x5   :  { %s957_s30 = scalar_lea.hbm %s1283_s1, 1024 }
   0x6   :  { %p958_p0 = scmp.ne.s32.totalorder %s1283_s1, %s957_s30  ;;  %p961_p1 = scmp.lt.u32.totalorder %s957_s30, %s1283_s1 }
   0x8   :  { %p963_p2 = pnand %p961_p1, %p958_p0 }
   0xa   :  { %966 = shalt.err (!%p963_p2)
}
   0xb   :  { %s967_s12 = scalar_lea.vmem %s34_s25, 1024  ;;  %p972_p4 = scmp.lt.s32.totalorder %s34_s25, %s34_s25 }
   0xc   :  { %p968_p3 = scmp.ne.s32.totalorder %s34_s25, %s967_s12  ;;  %p973_p5 = scmp.lt.s32.totalorder %s967_s12, %s967_s12 }
   0xe   :  { %p974_p6 = por %p973_p5, %p972_p4 }
  0x10   :  { %p975_p7 = pnand %p974_p6, %p968_p3 }
  0x12   :  { %978 = shalt.err (!%p975_p7)
}
  0x13   :  { %s1077_s13 = smov 128   ;;  %s1078_s14 = smov 8  }
  0x14   :  { %39 = dma.hbm_to_vmem [thread:$0]  %s1283_s1, 1024, %s34_s25, [#allocation6], %s1077_s13, %s1077_s13, %s1078_s14  }
  0x15   :  { %s979_s19 = scalar_lea.hbm %s1282_s0, 512 }
  0x16   :  { %p980_p8 = scmp.ne.s32.totalorder %s1282_s0, %s979_s19  ;;  %p983_p9 = scmp.lt.u32.totalorder %s979_s19, %s1282_s0 }
  0x18   :  { %p985_p10 = pnand %p983_p9, %p980_p8 }
  0x1a   :  { %988 = shalt.err (!%p985_p10)
}
  0x1b   :  { %s989_s24 = scalar_lea.vmem %s1123_s27, 512  ;;  %p994_p12 = scmp.lt.s32.totalorder %s1123_s27, %s1123_s27 }
  0x1c   :  { %p990_p11 = scmp.ne.s32.totalorder %s1123_s27, %s989_s24  ;;  %p995_p13 = scmp.lt.s32.totalorder %s989_s24, %s989_s24 }
  0x1e   :  { %p996_p0 = por %p995_p13, %p994_p12 }
  0x20   :  { %p997_p1 = pnand %p996_p0, %p990_p11 }
  0x22   :  { %1000 = shalt.err (!%p997_p1)
}
  0x23   :  { %27 = dma.hbm_to_vmem [thread:$0]  %s1282_s0, 512, %s1123_s27, [#allocation3], %s1077_s13, %s1077_s13, %s1078_s14  }
  0x24   :  { %s1079_s26 = smov [#allocation7]   ;;  %s1080_s29 = smov [#allocation8]  }
  0x25   :  { %s47_s28 = sshll.u32 %s1079_s26, 4  ;;  %s61_s30 = sshll.u32 %s1080_s29, 4  ;;  %s48_s28 = int_to_ptr.vmem [resolvable:$true] %s47_s28  ;;  %s1160_s30 = int_to_ptr.vmem [resolvable:$true] %s61_s30 }
  0x26   :  { %s1001_s10 = scalar_lea.hbm %s1285_s3, 6144 }
  0x27   :  { %p1002_p2 = scmp.ne.s32.totalorder %s1285_s3, %s1001_s10  ;;  %p1005_p3 = scmp.lt.u32.totalorder %s1001_s10, %s1285_s3 }
  0x29   :  { %p1007_p4 = pnand %p1005_p3, %p1002_p2 }
  0x2b   :  { %1010 = shalt.err (!%p1007_p4)
}
  0x2c   :  { %s1011_s0 = scalar_lea.vmem %s48_s28, 6144  ;;  %p1016_p6 = scmp.lt.s32.totalorder %s48_s28, %s48_s28 }
  0x2d   :  { %p1012_p5 = scmp.ne.s32.totalorder %s48_s28, %s1011_s0  ;;  %p1017_p7 = scmp.lt.s32.totalorder %s1011_s0, %s1011_s0 }
  0x2f   :  { %p1018_p8 = por %p1017_p7, %p1016_p6 }
  0x31   :  { %p1019_p9 = pnand %p1018_p8, %p1012_p5 }
  0x33   :  { %1022 = shalt.err (!%p1019_p9)
}
  0x34   :  { %53 = dma.hbm_to_vmem [thread:$0]  %s1285_s3, 6144, %s48_s28, [#allocation6], %s1077_s13, %s1077_s13, %s1078_s14  }
  0x35   :  { %s1023_s20 = scalar_lea.hbm %s1287_s5, 3072 }
  0x36   :  { %p1024_p10 = scmp.ne.s32.totalorder %s1287_s5, %s1023_s20  ;;  %p1027_p11 = scmp.lt.u32.totalorder %s1023_s20, %s1287_s5 }
  0x38   :  { %p1029_p12 = pnand %p1027_p11, %p1024_p10 }
  0x3a   :  { %1032 = shalt.err (!%p1029_p12)
}
  0x3b   :  { %s1033_s1 = scalar_lea.vmem %s1160_s30, 3072  ;;  %p1038_p0 = scmp.lt.s32.totalorder %s1160_s30, %s1160_s30 }
  0x3c   :  { %p1034_p13 = scmp.ne.s32.totalorder %s1160_s30, %s1033_s1  ;;  %p1039_p1 = scmp.lt.s32.totalorder %s1033_s1, %s1033_s1 }
  0x3e   :  { %p1040_p2 = por %p1039_p1, %p1038_p0 }
  0x40   :  { %p1041_p3 = pnand %p1040_p2, %p1034_p13 }
  0x42   :  { %1044 = shalt.err (!%p1041_p3)
}
  0x43   :  { %67 = dma.hbm_to_vmem [thread:$0]  %s1287_s5, 3072, %s1160_s30, [#allocation9], %s1077_s13, %s1077_s13, %s1078_s14  }
  0x44   :  { %1067 = dma.done.wait [#allocation3], 512  }
  0x45   :  { %1068 = vsyncadd [#allocation3], 4294966784 }
  0x46   :  { %1069 = dma.done.wait [#allocation6], 7168  }
  0x47   :  { %1070 = vsyncadd [#allocation6], 4294960128 }
  0x48   :  { %1071 = dma.done.wait [#allocation9], 3072  }
  0x49   :  { %1072 = vsyncadd [#allocation9], 4294964224  ;;  %v86_v0 = vld [vmem:[#allocation5] sm:$0xff]  ;;  %v87_v1 = vld [vmem:[#allocation5 + $0x8] sm:$0xff]  ;;  %vm101_vm0 = vcmask 523264   ;;  %vm207_vm1 = vcmask 1040384  }
  0x4a   :  { %v88_v2 = vld [vmem:[#allocation5 + $0x10] sm:$0xff]  ;;  %v833_v3 = vpack.c.bf16 %v87_v1, %v86_v0  ;;  %v89_v4 = vld [vmem:[#allocation5 + $0x18] sm:$0xff]  ;;  %v90_v6 = vld [vmem:[#allocation5 + $0x20] sm:$0xff]  ;;  %vm220_vm3 = vcmask 1046528   ;;  %s1082_s30 = smov [#allocation10]  }
  0x4b   :  { %v837_v5 = vpack.c.bf16 %v89_v4, %v88_v2  ;;  %v91_v7 = vld [vmem:[#allocation5 + $0x28] sm:$0xff]  ;;  %v1197_v8 = vld [vmem:[#allocation2] sm:$0xff]  ;;  %v92_v9 = vld [vmem:[#allocation5 + $0x30] sm:$0xff]  ;;  %s660_s8 = sshll.u32 %s1082_s30, 4  ;;  %s661_s8 = int_to_ptr.vmem [resolvable:$true] %s660_s8 }
  0x4c   :  { %834 = vmatprep.subr.bf16.mxu1 %v833_v3  ;;  %789 = vmatprep.mubr.msk.f32.mxu1 %vm101_vm0, %v1197_v8  ;;  %v93_v10 = vld [vmem:[#allocation5 + $0x38] sm:$0xff]  ;;  %v318_v11 = vld [vmem:[#allocation7 + $0x80] sm:$0xff]  ;;  %v319_v12 = vld [vmem:[#allocation7 + $0x88] sm:$0xff]  ;;  %v841_v14 = vpack.c.bf16 %v91_v7, %v90_v6  ;;  %v1081_v6 = vmov 0.0|0.0   ;;  %p1050_p5 = scmp.lt.s32.totalorder %s661_s8, %s661_s8 }
  0x4d   :  { %836 = vmatpush3.bf16.msra.mxu1 %v833_v3  ;;  %v302_v13 = vld [vmem:[#allocation7] sm:$0xff]  ;;  %v849_v15 = vpack.c.bf16 %v319_v12, %v318_v11  ;;  %v303_v16 = vld [vmem:[#allocation7 + $0x8] sm:$0xff]  ;;  %v320_v17 = vld [vmem:[#allocation7 + $0x90] sm:$0xff]  ;;  %v845_v26 = vpack.c.bf16 %v93_v10, %v92_v9 }
  0x4e   :  { %838 = vmatprep.subr.bf16.mxu1 %v837_v5  ;;  %v321_v18 = vld [vmem:[#allocation7 + $0x98] sm:$0xff]  ;;  %v851_v19 = vpack.c.bf16 %v303_v16, %v302_v13  ;;  %v304_v21 = vld [vmem:[#allocation7 + $0x10] sm:$0xff]  ;;  %v322_v23 = vld [vmem:[#allocation7 + $0xa0] sm:$0xff]  ;;  %v233_v13 = vlaneseq }
  0x4f   :  { %v853_v20 = vpack.c.bf16 %v321_v18, %v320_v17  ;;  %v305_v22 = vld [vmem:[#allocation7 + $0x18] sm:$0xff]  ;;  %850 = vmatprep.subr.bf16.mxu0 %v849_v15  ;;  %v323_v24 = vld [vmem:[#allocation7 + $0xa8] sm:$0xff]  ;;  %v306_v28 = vld [vmem:[#allocation7 + $0x20] sm:$0xff] }
  0x50   :  { %852 = vmatpush3.bf16.msra.mxu0 %v851_v19  ;;  %v855_v25 = vpack.c.bf16 %v305_v22, %v304_v21  ;;  %v857_v27 = vpack.c.bf16 %v323_v24, %v322_v23  ;;  %v307_v29 = vld [vmem:[#allocation7 + $0x28] sm:$0xff]  ;;  %v324_v30 = vld [vmem:[#allocation7 + $0xb0] sm:$0xff]  ;;  %v325_v31 = vld [vmem:[#allocation7 + $0xb8] sm:$0xff] }
  0x51   :  { %840 = vmatpush3.bf16.msra.mxu1 %v837_v5  ;;  %854 = vmatprep.subr.bf16.mxu0 %v853_v20  ;;  %v859_v32 = vpack.c.bf16 %v307_v29, %v306_v28  ;;  %v861_v33 = vpack.c.bf16 %v325_v31, %v324_v30  ;;  %v308_v34 = vld [vmem:[#allocation7 + $0x30] sm:$0xff]  ;;  %v309_v35 = vld [vmem:[#allocation7 + $0x38] sm:$0xff]  ;;  %v326_v36 = vld [vmem:[#allocation7 + $0xc0] sm:$0xff] }
  0x52   :  { %842 = vmatprep.subr.bf16.mxu1 %v841_v14  ;;  %v327_v37 = vld [vmem:[#allocation7 + $0xc8] sm:$0xff]  ;;  %v863_v39 = vpack.c.bf16 %v309_v35, %v308_v34  ;;  %v1203_v40 = vld [vmem:[#allocation2 + $0x10] sm:$0xff]  ;;  %v310_v42 = vld [vmem:[#allocation7 + $0x40] sm:$0xff] }
  0x53   :  { %v1201_v38 = vld [vmem:[#allocation2 + $0x8] sm:$0xff]  ;;  %v865_v41 = vpack.c.bf16 %v327_v37, %v326_v36  ;;  %v328_v44 = vld [vmem:[#allocation7 + $0xd0] sm:$0xff]  ;;  %v329_v45 = vld [vmem:[#allocation7 + $0xd8] sm:$0xff] }
  0x54   :  { %856 = vmatpush3.bf16.msra.mxu0 %v855_v25  ;;  %v311_v43 = vld [vmem:[#allocation7 + $0x48] sm:$0xff]  ;;  %v1209_v46 = vld [vmem:[#allocation2 + $0x18] sm:$0xff]  ;;  %v869_v48 = vpack.c.bf16 %v329_v45, %v328_v44  ;;  %v312_v49 = vld [vmem:[#allocation7 + $0x50] sm:$0xff] }
  0x55   :  { %844 = vmatpush3.bf16.msra.mxu1 %v841_v14  ;;  %858 = vmatprep.subr.bf16.mxu0 %v857_v27  ;;  %v867_v47 = vpack.c.bf16 %v311_v43, %v310_v42  ;;  %v313_v50 = vld [vmem:[#allocation7 + $0x58] sm:$0xff]  ;;  %v330_v52 = vld [vmem:[#allocation7 + $0xe0] sm:$0xff]  ;;  %v331_v53 = vld [vmem:[#allocation7 + $0xe8] sm:$0xff]  ;;  %v1219_v14 = vshrl.u32 %v233_v13, 7 }
  0x56   :  { %846 = vmatprep.subr.bf16.mxu1 %v845_v26  ;;  %v871_v51 = vpack.c.bf16 %v313_v50, %v312_v49  ;;  %v873_v54 = vpack.c.bf16 %v331_v53, %v330_v52  ;;  %v314_v55 = vld [vmem:[#allocation7 + $0x60] sm:$0xff]  ;;  %v315_v56 = vld [vmem:[#allocation7 + $0x68] sm:$0xff]  ;;  %v332_v58 = vld [vmem:[#allocation7 + $0xf0] sm:$0xff] }
  0x57   :  { %v875_v57 = vpack.c.bf16 %v315_v56, %v314_v55  ;;  %v333_v59 = vld [vmem:[#allocation7 + $0xf8] sm:$0xff]  ;;  %v316_v61 = vld [vmem:[#allocation7 + $0x70] sm:$0xff]  ;;  %v334_v0 = vld [vmem:[#allocation7 + $0x100] sm:$0xff]  ;;  %v242_v17 = vand.u32 15, %v1219_v14  ;;  %v236_v34 = vadd.s32 16, %v1219_v14 }
  0x58   :  { %860 = vmatpush3.bf16.msra.mxu0 %v859_v32  ;;  %v877_v60 = vpack.c.bf16 %v333_v59, %v332_v58  ;;  %v317_v62 = vld [vmem:[#allocation7 + $0x78] sm:$0xff]  ;;  %v335_v1 = vld [vmem:[#allocation7 + $0x108] sm:$0xff]  ;;  %v531_v3 = vld [vmem:[#allocation8] sm:$0xff] }
  0x59   :  { %848 = vmatpush3.bf16.msra.mxu1 %v845_v26  ;;  %862 = vmatprep.subr.bf16.mxu0 %v861_v33  ;;  %v879_v63 = vpack.c.bf16 %v317_v62, %v316_v61  ;;  %v881_v2 = vpack.c.bf16 %v335_v1, %v334_v0  ;;  %v532_v4 = vld [vmem:[#allocation8 + $0x8] sm:$0xff]  ;;  %v533_v5 = vld [vmem:[#allocation8 + $0x10] sm:$0xff]  ;;  %v535_v10 = vld [vmem:[#allocation8 + $0x20] sm:$0xff]  ;;  %vm1225_vm2 = vcmp.ne.s32.totalorder %v242_v17, 0  ;;  %v256_v50 = vand.u32 15, %v236_v34 }
  0x5a   :  { %913 = vmatprep.subr.bf16.mxu1 %v1081_v6  ;;  %v914_v7 = vpack.c.bf16 %v532_v4, %v531_v3  ;;  %v536_v11 = vld [vmem:[#allocation8 + $0x28] sm:$0xff]  ;;  %v674_v15 = vld [vmem:[%s1284_s2] ss:$0 sm:$0xff]  ;;  %v336_v25 = vld [vmem:[#allocation7 + $0x110] sm:$0xff] }
  0x5b   :  { %v920_v12 = vpack.c.bf16 %v536_v11, %v535_v10  ;;  %v337_v26 = vld [vmem:[#allocation7 + $0x118] sm:$0xff]  ;;  %v338_v42 = vld [vmem:[#allocation7 + $0x120] sm:$0xff]  ;;  %v339_v43 = vld [vmem:[#allocation7 + $0x128] sm:$0xff]  ;;  %vm694_vm4 = vcmp.ne.s32.totalorder %v256_v50, 0  ;;  %v237_v10 = vadd.s32 24, %v1219_v14 }
  0x5c   :  { %790 = vmatmul.mubr.msk.f32.vlgmr.msra.gmra.mrb[0].mxu1 %vm101_vm0, %v1201_v38  ;;  %864 = vmatpush3.bf16.msra.mxu0 %v863_v39  ;;  %v885_v36 = vpack.c.bf16 %v337_v26, %v336_v25  ;;  %v340_v53 = vld [vmem:[#allocation7 + $0x130] sm:$0xff]  ;;  %v342_v59 = vld [vmem:[#allocation7 + $0x140] sm:$0xff]  ;;  %v546_v26 = vld [vmem:[#allocation8 + $0x78] sm:$0xff] }
  0x5d   :  { %792 = vmatprep.mubr.msk.f32.mxu1 %vm101_vm0, %v1203_v40  ;;  %866 = vmatprep.subr.bf16.mxu0 %v865_v41  ;;  %v344_v62 = vld [vmem:[#allocation7 + $0x150] sm:$0xff]  ;;  %v346_v1 = vld [vmem:[#allocation7 + $0x160] sm:$0xff]  ;;  %v263_v11 = vand.u32 15, %v237_v10 }
  0x5e   :  { %915 = vmatpush1.bf16.msra.mxu1 %v914_v7  ;;  %v348_v4 = vld [vmem:[#allocation7 + $0x170] sm:$0xff]  ;;  %v235_v7 = vadd.s32 8, %v1219_v14  ;;  %v539_v17 = vld [vmem:[#allocation8 + $0x40] sm:$0xff] }
  0x5f   :  { %916 = vmatprep.subr.bf16.mxu1 %v1081_v6  ;;  %vm696_vm6 = vcmp.ne.s32.totalorder %v263_v11, 15  ;;  %v537_v13 = vld [vmem:[#allocation8 + $0x30] sm:$0xff]  ;;  %v551_v34 = vld [vmem:[#allocation8 + $0xa0] sm:$0xff] }
  0x60   :  { %793 = vmatmul.mubr.msk.f32.gmra.mrb[2].mxu1 %vm101_vm0, %v1209_v46  ;;  %868 = vmatpush3.bf16.msra.mxu0 %v867_v47  ;;  %v541_v14 = vld [vmem:[#allocation8 + $0x50] sm:$0xff] }
  0x61   :  { %689 = vmatprep.mubr.msk.f32.mxu1 %vm101_vm0, %v1197_v8  ;;  %870 = vmatprep.subr.bf16.mxu0 %v869_v48  ;;  %v534_v8 = vld [vmem:[#allocation8 + $0x18] sm:$0xff]  ;;  %v545_v25 = vld [vmem:[#allocation8 + $0x70] sm:$0xff] }
  0x62   :  { %v917_v9 = vpack.c.bf16 %v534_v8, %v533_v5  ;;  %v349_v5 = vld [vmem:[#allocation7 + $0x178] sm:$0xff] }
  0x63   :  { %v909_v8 = vpack.c.bf16 %v349_v5, %v348_v4 }
  0x64   :  { %872 = vmatpush3.bf16.msra.mxu0 %v871_v51  ;;  %918 = vmatpush1.bf16.msra.mxu1 %v917_v9  ;;  %v889_v51 = vpack.c.bf16 %v339_v43, %v338_v42  ;;  %v249_v9 = vand.u32 15, %v235_v7 }
  0x65   :  { %874 = vmatprep.subr.bf16.mxu0 %v873_v54  ;;  %919 = vmatprep.subr.bf16.mxu1 %v1081_v6  ;;  %v341_v54 = vld [vmem:[#allocation7 + $0x138] sm:$0xff] }
  0x66   :  { %v893_v58 = vpack.c.bf16 %v341_v54, %v340_v53  ;;  %vm695_vm5 = vcmp.ne.s32.totalorder %v249_v9, 15 }
  0x68   :  { %876 = vmatpush3.bf16.msra.mxu0 %v875_v57  ;;  %921 = vmatpush1.bf16.msra.mxu1 %v920_v12 }
  0x69   :  { %878 = vmatprep.subr.bf16.mxu0 %v877_v60  ;;  %922 = vmatprep.subr.bf16.mxu1 %v1081_v6  ;;  %v343_v60 = vld [vmem:[#allocation7 + $0x148] sm:$0xff] }
  0x6a   :  { %v897_v61 = vpack.c.bf16 %v343_v60, %v342_v59 }
  0x6c   :  { %880 = vmatpush3.bf16.msra.mxu0 %v879_v63  ;;  %v345_v63 = vld [vmem:[#allocation7 + $0x158] sm:$0xff] }
  0x6d   :  { %882 = vmatprep.subr.bf16.mxu0 %v881_v2  ;;  %v901_v0 = vpack.c.bf16 %v345_v63, %v344_v62 }
 0x12f   :  { %v791_v16 = vpop.f32.mrb[0].mxu1 }
 0x130   :  { %v186_v18 = vadd.f32 %v791_v16, %v674_v15  ;;  %v180_v19 = vpop.f32.mrb[1].mxu1 }
 0x131   :  { %v181_v20 = vadd.f32 %v674_v15, %v180_v19 }
 0x132   :  { %v200_v21 = vmax.f32 %v186_v18, 0.0  ;;  %v540_v18 = vld [vmem:[#allocation8 + $0x48] sm:$0xff] }
 0x133   :  { %v199_v22 = vmax.f32 %v181_v20, 0.0  ;;  %v794_v23 = vpop.f32.mrb[2].mxu1  ;;  %v926_v19 = vpack.c.bf16 %v540_v18, %v539_v17  ;;  %v542_v20 = vld [vmem:[#allocation8 + $0x58] sm:$0xff] }
 0x134   :  { %v209_v27 = vrot.slane %v200_v21, 7  ;;  %v222_v28 = vrot.slane %v200_v21, 1  ;;  %v196_v29 = vadd.f32 %v794_v23, %v674_v15  ;;  %v190_v30 = vpop.f32.mrb[3].mxu1  ;;  %v544_v23 = vld [vmem:[#allocation8 + $0x68] sm:$0xff] }
 0x135   :  { %v221_v31 = vrot.slane %v199_v22, 1  ;;  %v191_v32 = vadd.f32 %v674_v15, %v190_v30  ;;  %421 = vmatprep.mubr.f32.mxu0 %v199_v22  ;;  %v208_v33 = vrot.slane %v199_v22, 7  ;;  %v538_v15 = vld [vmem:[#allocation8 + $0x38] sm:$0xff]  ;;  %v543_v22 = vld [vmem:[#allocation8 + $0x60] sm:$0xff] }
 0x136   :  { %v1230_v35 = vmax.f32 %v196_v29, 0.0  ;;  %v923_v16 = vpack.c.bf16 %v538_v15, %v537_v13  ;;  %v932_v24 = vpack.c.bf16 %v544_v23, %v543_v22  ;;  %v548_v29 = vld [vmem:[#allocation8 + $0x88] sm:$0xff] }
 0x137   :  { %v201_v37 = vmax.f32 %v191_v32, 0.0  ;;  %v219_v39 = vsel %vm207_vm1, 0.0, %v208_v33  ;;  %v210_v41 = vsel %vm207_vm1, %v208_v33, %v209_v27  ;;  %v223_v44 = vsel %vm220_vm3, %v221_v31, %v222_v28  ;;  %v549_v31 = vld [vmem:[#allocation8 + $0x90] sm:$0xff]  ;;  %v550_v32 = vld [vmem:[#allocation8 + $0x98] sm:$0xff] }
 0x138   :  { %v213_v45 = vrot.slane %v1230_v35, 7  ;;  %v226_v47 = vrot.slane %v1230_v35, 1  ;;  %681 = vmatmul.mubr.msk.f32.vlgmr.msra.gmra.mrb[0].mxu0 %vm1225_vm2, %v219_v39  ;;  %924 = vmatpush1.bf16.msra.mxu1 %v923_v16  ;;  %v941_v33 = vpack.c.bf16 %v550_v32, %v549_v31  ;;  %v554_v39 = vld [vmem:[#allocation8 + $0xb8] sm:$0xff] }
 0x139   :  { %v211_v48 = vrot.slane %v201_v37, 7  ;;  %v224_v49 = vrot.slane %v201_v37, 1  ;;  %884 = vmatpush3.bf16.msra.mxu0 %v881_v2  ;;  %426 = vmatprep.mubr.f32.mxu0 %v200_v21  ;;  %v347_v2 = vld [vmem:[#allocation7 + $0x168] sm:$0xff]  ;;  %v929_v21 = vpack.c.bf16 %v542_v20, %v541_v14 }
 0x13a   :  { %886 = vmatprep.subr.bf16.mxu0 %v885_v36  ;;  %v905_v3 = vpack.c.bf16 %v347_v2, %v346_v1  ;;  %v232_v12 = vsel %vm220_vm3, %v226_v47, 0.0  ;;  %925 = vmatprep.subr.bf16.mxu1 %v1081_v6 }
 0x13b   :  { %v212_v52 = vsel %vm207_vm1, %v209_v27, %v211_v48  ;;  %v214_v55 = vsel %vm207_vm1, %v211_v48, %v213_v45  ;;  %v225_v56 = vsel %vm220_vm3, %v222_v28, %v224_v49  ;;  %v227_v57 = vsel %vm220_vm3, %v224_v49, %v226_v47  ;;  %v547_v28 = vld [vmem:[#allocation8 + $0x80] sm:$0xff] }
 0x13c   :  { %427 = vmatmul.mubr.f32.gmra.mrb[2].mxu0 %v210_v41  ;;  %927 = vmatpush1.bf16.msra.mxu1 %v926_v19  ;;  %v935_v27 = vpack.c.bf16 %v546_v26, %v545_v25  ;;  %v938_v30 = vpack.c.bf16 %v548_v29, %v547_v28 }
 0x13d   :  { %888 = vmatpush3.bf16.msra.mxu0 %v885_v36  ;;  %431 = vmatprep.mubr.f32.mxu0 %v201_v37  ;;  %v553_v37 = vld [vmem:[#allocation8 + $0xb0] sm:$0xff] }
 0x13e   :  { %890 = vmatprep.subr.bf16.mxu0 %v889_v51  ;;  %928 = vmatprep.subr.bf16.mxu1 %v1081_v6  ;;  %v947_v41 = vpack.c.bf16 %v554_v39, %v553_v37 }
 0x140   :  { %683 = vmatmul.mubr.msk.f32.gmra.mrb[4].mxu0 %vm694_vm4, %v212_v52  ;;  %930 = vmatpush1.bf16.msra.mxu1 %v929_v21 }
 0x141   :  { %892 = vmatpush3.bf16.msra.mxu0 %v889_v51  ;;  %436 = vmatprep.mubr.f32.mxu0 %v1230_v35  ;;  %v552_v35 = vld [vmem:[#allocation8 + $0xa8] sm:$0xff] }
 0x142   :  { %894 = vmatprep.subr.bf16.mxu0 %v893_v58  ;;  %931 = vmatprep.subr.bf16.mxu1 %v1081_v6  ;;  %v944_v36 = vpack.c.bf16 %v552_v35, %v551_v34 }
 0x144   :  { %437 = vmatmul.mubr.f32.gmra.mrb[6].mxu0 %v214_v55  ;;  %933 = vmatpush1.bf16.msra.mxu1 %v932_v24 }
 0x145   :  { %896 = vmatpush3.bf16.msra.mxu0 %v893_v58  ;;  %827 = vmatprep.mubr.f32.mxu0 %v223_v44 }
 0x146   :  { %898 = vmatprep.subr.bf16.mxu0 %v897_v61  ;;  %934 = vmatprep.subr.bf16.mxu1 %v1081_v6 }
 0x148   :  { %936 = vmatpush1.bf16.msra.mxu1 %v935_v27 }
 0x149   :  { %900 = vmatpush3.bf16.msra.mxu0 %v897_v61  ;;  %937 = vmatprep.subr.bf16.mxu1 %v1081_v6 }
 0x14a   :  { %902 = vmatprep.subr.bf16.mxu0 %v901_v0 }
 0x14c   :  { %939 = vmatpush1.bf16.msra.mxu1 %v938_v30 }
 0x14d   :  { %904 = vmatpush3.bf16.msra.mxu0 %v901_v0  ;;  %940 = vmatprep.subr.bf16.mxu1 %v1081_v6 }
 0x14e   :  { %906 = vmatprep.subr.bf16.mxu0 %v905_v3 }
 0x150   :  { %942 = vmatpush1.bf16.msra.mxu1 %v941_v33 }
 0x151   :  { %908 = vmatpush3.bf16.msra.mxu0 %v905_v3  ;;  %943 = vmatprep.subr.bf16.mxu1 %v1081_v6 }
 0x152   :  { %910 = vmatprep.subr.bf16.mxu0 %v909_v8 }
 0x154   :  { %945 = vmatpush1.bf16.msra.mxu1 %v944_v36 }
 0x155   :  { %912 = vmatpush3.bf16.msra.mxu0 %v909_v8  ;;  %946 = vmatprep.subr.bf16.mxu1 %v1081_v6  ;;  %v679_v6 = vld [vmem:[%s1286_s4] ss:$0 sm:$0xff] }
 0x156   :  { %v688_v8 = vld [vmem:[%s1288_s6] ss:$0 sm:$0xff]  ;;  %s1045_s6 = scalar_lea.vmem %s661_s8, 512 }
 0x157   :  { %p1046_p4 = scmp.ne.s32.totalorder %s661_s8, %s1045_s6  ;;  %p1051_p6 = scmp.lt.s32.totalorder %s1045_s6, %s1045_s6 }
 0x158   :  { %828 = vmatmul.mubr.msk.f32.vlgmr.msra.gmra.mrb[8].mxu0 %vm695_vm5, %v225_v56  ;;  %948 = vmatpush1.bf16.msra.mxu1 %v947_v41 }
 0x159   :  { %830 = vmatprep.mubr.f32.mxu0 %v227_v57  ;;  %p1052_p7 = por %p1051_p6, %p1050_p5 }
 0x15b   :  { %p1053_p8 = pnand %p1052_p7, %p1046_p4 }
 0x15c   :  { %831 = vmatmul.mubr.msk.f32.gmra.mrb[10].mxu0 %vm696_vm6, %v232_v12 }
 0x20b   :  { %v741_v42 = vpop.f32.mrb[0].mxu0 }
 0x20c   :  { %v742_v43 = vpop.f32.mrb[1].mxu0 }
 0x20d   :  { %v743_v44 = vadd.f32 %v742_v43, %v741_v42 }
 0x20f   :  { %v744_v45 = vpop.f32.mrb[2].mxu0  ;;  %v424_v57 = vadd.f32 %v743_v44, %v679_v6 }
 0x210   :  { %v745_v47 = vpop.f32.mrb[3].mxu0 }
 0x211   :  { %v746_v48 = vadd.f32 %v745_v47, %v744_v45 }
 0x213   :  { %v747_v49 = vpop.f32.mrb[4].mxu0  ;;  %v429_v55 = vadd.f32 %v746_v48, %v679_v6 }
 0x214   :  { %v748_v50 = vpop.f32.mrb[5].mxu0 }
 0x215   :  { %v749_v51 = vadd.f32 %v748_v50, %v747_v49 }
 0x217   :  { %v750_v52 = vpop.f32.mrb[6].mxu0  ;;  %v434_v0 = vadd.f32 %v749_v51, %v679_v6 }
 0x218   :  { %v751_v53 = vpop.f32.mrb[7].mxu0 }
 0x219   :  { %v752_v54 = vadd.f32 %v751_v53, %v750_v52 }
 0x21b   :  { %v439_v61 = vadd.f32 %v752_v54, %v679_v6 }
 0x22b   :  { %v829_v56 = vpop.f32.mrb[8].mxu0 }
 0x22c   :  { %v514_v58 = vadd.f32 %v829_v56, %v429_v55  ;;  %v508_v59 = vpop.f32.mrb[9].mxu0 }
 0x22d   :  { %v509_v60 = vadd.f32 %v508_v59, %v424_v57 }
 0x22e   :  { %v528_v4 = vmax.f32 %v514_v58, 0.0 }
 0x22f   :  { %v527_v62 = vmax.f32 %v509_v60, 0.0  ;;  %v832_v63 = vpop.f32.mrb[10].mxu0 }
 0x230   :  { %v524_v1 = vadd.f32 %v832_v63, %v439_v61  ;;  %v518_v2 = vpop.f32.mrb[11].mxu0 }
 0x231   :  { %v519_v3 = vadd.f32 %v518_v2, %v434_v0  ;;  %627 = vmatmul.mubr.f32.vlgmr.msra.gmra.mrb[4].mxu1 %v527_v62 }
 0x232   :  { %690 = vmatprep.mubr.msk.f32.mxu1 %vm101_vm0, %v1201_v38  ;;  %v530_v7 = vmax.f32 %v524_v1, 0.0 }
 0x233   :  { %v529_v5 = vmax.f32 %v519_v3, 0.0 }
 0x235   :  { %632 = vmatmul.mubr.f32.gmra.mrb[6].mxu1 %v528_v4 }
 0x236   :  { %691 = vmatprep.mubr.msk.f32.mxu1 %vm101_vm0, %v1203_v40 }
 0x239   :  { %637 = vmatmul.mubr.f32.gmra.mrb[8].mxu1 %v529_v5 }
 0x23a   :  { %692 = vmatprep.mubr.msk.f32.mxu1 %vm101_vm0, %v1209_v46 }
 0x23d   :  { %642 = vmatmul.mubr.f32.gmra.mrb[10].mxu1 %v530_v7 }
 0x304   :  { %v628_v9 = vpop.f32.mrb[4].mxu1 }
 0x305   :  { %v629_v10 = vadd.f32 %v688_v8, %v628_v9  ;;  %v630_v11 = vpop.f32.mrb[5].mxu1 }
 0x307   :  { %v647_v38 = vmax.f32 %v629_v10, 0.0 }
 0x308   :  { %v633_v12 = vpop.f32.mrb[6].mxu1 }
 0x309   :  { %651 = vst [vmem:[#allocation10] sm:$0xff] %v647_v38  ;;  %v634_v13 = vadd.f32 %v688_v8, %v633_v12  ;;  %v635_v15 = vpop.f32.mrb[7].mxu1 }
 0x30b   :  { %v648_v40 = vmax.f32 %v634_v13, 0.0 }
 0x30c   :  { %v638_v16 = vpop.f32.mrb[8].mxu1 }
 0x30d   :  { %652 = vst [vmem:[#allocation10 + $0x8] sm:$0xff] %v648_v40  ;;  %v639_v17 = vadd.f32 %v688_v8, %v638_v16  ;;  %v640_v18 = vpop.f32.mrb[9].mxu1 }
 0x30f   :  { %v649_v46 = vmax.f32 %v639_v17, 0.0 }
 0x310   :  { %v643_v19 = vpop.f32.mrb[10].mxu1 }
 0x311   :  { %653 = vst [vmem:[#allocation10 + $0x10] sm:$0xff] %v649_v46  ;;  %v644_v14 = vadd.f32 %v688_v8, %v643_v19  ;;  %v645_v20 = vpop.f32.mrb[11].mxu1 }
 0x313   :  { %v650_v21 = vmax.f32 %v644_v14, 0.0 }
 0x315   :  { %654 = vst [vmem:[#allocation10 + $0x18] sm:$0xff] %v650_v21 }
 0x316   :  { %1056 = shalt.err (!%p1053_p8)
}
 0x317   :  { %s1057_s11 = scalar_lea.hbm %s1289_s7, 512 }
 0x318   :  { %p1058_p9 = scmp.ne.s32.totalorder %s1289_s7, %s1057_s11  ;;  %p1061_p10 = scmp.lt.u32.totalorder %s1057_s11, %s1289_s7 }
 0x31a   :  { %p1063_p11 = pnand %p1061_p10, %p1058_p9 }
 0x31c   :  { %1066 = shalt.err (!%p1063_p11)
}
 0x31d   :  { %666 = dma.vmem_to_hbm [thread:$0]  %s661_s8, 512, %s1289_s7, [#allocation4], %s1077_s13, %s1077_s13, %s1078_s14  }
 0x31e   :  { %1073 = dma.done.wait [#allocation4], 512  }
 0x31f   :  { %1074 = vsyncadd [#allocation4], 4294966784 }
 0x320   :  { %670 = vsyncpa [#allocation3], 1 }
 0x321   :  { %671 = vsyncpa [#allocation6], 1 }
 0x322   :  { %672 = vsyncpa [#allocation9], 1 }
 0x323   :  { %673 = vsyncpa [#allocation4], 1 }

</bundles_post_ra>
